<compile_context>
chip_gen: v5e
topology: v5e:2x2
jax: 0.10.0
libtpu: 0.0.40
codegen_flags: <defaults>
</compile_context>

<pallas_src>
import functools
import math

import jax
import jax.numpy as jnp
from jax.experimental import pallas as pl
from jax.experimental.pallas import tpu as pltpu


def _label_smoothing_kernel(x_ref, tgt_ref, out_ref, *,
                            off_value: float, conf_minus_off: float,
                            n_valid: int, tile_n: int):
    i = pl.program_id(0)

    x = x_ref[...]                           # (TILE_N, C) logits, native dtype
    tgt = tgt_ref[...]                       # (TILE_N, 1) int32 class indices
    tn, c = x.shape

    # Per-row log-softmax pieces.  max / plain-sum / target-select stay in the
    # native dtype; exp / sum-exp and all per-row scalars are f32.  No explicit
    # (TILE_N, C) f32 temporary is kept live across statements.
    m = jnp.max(x, axis=1, keepdims=True).astype(jnp.float32)          # (tn,1)
    row_sum_x = jnp.sum(x, axis=1, keepdims=True, dtype=jnp.float32)   # (tn,1)

    col = jax.lax.broadcasted_iota(jnp.int32, (tn, c), 1)
    x_at_tgt = jnp.sum(jnp.where(col == tgt, x, 0.0), axis=1,
                       keepdims=True).astype(jnp.float32)              # (tn,1)

    sum_exp = jnp.sum(jnp.exp(x - m), axis=1, keepdims=True)           # f32
    lse = jnp.log(sum_exp)

    # sum_c logp_c = sum_c x_c - C*(m + lse);  logp[target] = x[target] - m - lse
    row_sum_logprob = row_sum_x - c * (m + lse)
    logprob_tgt = x_at_tgt - m - lse

    # data-dependent part of  -sum_c t_c * log_prob_c  per row
    row_loss = -(off_value * row_sum_logprob + conf_minus_off * logprob_tgt)

    # zero rows past the true batch size (ragged last grid step reads garbage;
    # all reductions above are per-row, so masking here is sufficient)
    grow = i * tile_n + jax.lax.broadcasted_iota(jnp.int32, (tn, 1), 0)
    row_loss = jnp.where(grow < n_valid, row_loss, 0.0)

    partial = jnp.sum(row_loss)

    # lane-dense, unmasked store of this tile's partial; host reads [i, 0, 0]
    out_ref[...] = jnp.broadcast_to(partial, (1, 8, 128))


def _round_up(x: int, m: int) -> int:
    return ((x + m - 1) // m) * m


def _pick_tile_n(n: int, c: int, itemsize: int, sublane: int) -> int:
    # ~2 MiB of streamed input per grid step.  Per-row bytes include the logits
    # row AND the lane-padded (TILE_N, 1) int32 target block (128 * 4 B/row),
    # so the target buffers no longer silently steal VMEM headroom.
    target_bytes = 2 << 20
    row_bytes = c * itemsize + 128 * 4
    rows = max(sublane, target_bytes // row_bytes)
    rows = min(rows, _round_up(n, sublane))
    rows = max(sublane, (rows // sublane) * sublane)
    # v7x has 2 TensorCores: make sure the "parallel" grid axis has >= 2 steps
    # whenever the batch can actually be split.
    if n > sublane and rows >= n:
        rows = max(sublane, _round_up(pl.cdiv(n, 2), sublane))
    return rows


def _xlogy(a: float) -> float:
    return 0.0 if a == 0.0 else a * math.log(a)


def label_smoothing_loss(logits, target, smoothing=0.0, tile_n=None):
    """logits: (N, C) float (any float dtype), target: (N,) int -> scalar loss."""
    n, c = logits.shape
    if c < 2:
        # PyTorch module divides smoothing by (C-1).
        raise ValueError("LabelSmoothingLoss requires at least 2 classes.")

    confidence = 1.0 - smoothing
    off_value = smoothing / (c - 1)
    conf_minus_off = confidence - off_value
    # closed-form  sum_c xlogy(t_c, t_c)  per row (xlogy: 0*log(0) = 0)
    row_const = _xlogy(confidence) + (c - 1) * _xlogy(off_value)

    itemsize = jnp.dtype(logits.dtype).itemsize
    sublane = {4: 8, 2: 16, 1: 32}.get(itemsize, 8)
    if tile_n is None:
        tile_n = _pick_tile_n(n, c, itemsize, sublane)
    else:
        tile_n = max(sublane, _round_up(int(tile_n), sublane))

    num_tiles = pl.cdiv(n, tile_n)           # ragged last block, no host pad
    tgt2d = target.astype(jnp.int32).reshape(n, 1)

    kernel = functools.partial(
        _label_smoothing_kernel,
        off_value=float(off_value),
        conf_minus_off=float(conf_minus_off),
        n_valid=n,
        tile_n=tile_n,
    )

    partials = pl.pallas_call(
        kernel,
        out_shape=jax.ShapeDtypeStruct((num_tiles, 8, 128), jnp.float32),
        grid_spec=pltpu.PrefetchScalarGridSpec(
            num_scalar_prefetch=0,
            grid=(num_tiles,),
            in_specs=[
                pl.BlockSpec((tile_n, c), lambda i: (i, 0)),   # logits tile (native dtype)
                pl.BlockSpec((tile_n, 1), lambda i: (i, 0)),   # target tile
            ],
            out_specs=pl.BlockSpec((1, 8, 128), lambda i: (i, 0, 0)),
        ),
        compiler_params=pltpu.CompilerParams(
            dimension_semantics=("parallel",),      # per-tile outputs -> safe to shard
            vmem_limit_bytes=32 * 1024 * 1024,      # same ceiling on v5e/v6e/v7x
        ),
    )(logits, tgt2d)

    # tiny finalize in plain JAX: one scalar per tile, add constant, /N once.
    return (jnp.sum(partials[:, 0, 0]) + n * row_const) / n


def _reference_loss(logits, target, smoothing):
    n, c = logits.shape
    x = logits.astype(jnp.float32)
    one_hot = jax.nn.one_hot(target, c, dtype=jnp.float32)
    smoothed = one_hot * (1.0 - smoothing) + (1.0 - one_hot) * smoothing / (c - 1)
    log_prob = jax.nn.log_softmax(x, axis=1)
    t_log_t = jnp.where(smoothed > 0.0,
                        smoothed * jnp.log(jnp.maximum(smoothed, 1e-38)),
                        0.0)
    return jnp.sum(t_log_t - smoothed * log_prob) / n


if __name__ == "__main__":
    key = jax.random.PRNGKey(0)
    k1, k2, k3, k4, k5, k6 = jax.random.split(key, 6)
    smoothing = 0.1

    # Case 1: f32 logits, single tile (matches the module's typical small use).
    N, C = 8, 32
    logits = jax.random.normal(k1, (N, C), dtype=jnp.float32)
    target = jax.random.randint(k2, (N,), 0, C, dtype=jnp.int32)
    loss = jax.block_until_ready(label_smoothing_loss(logits, target, smoothing))
    ref = _reference_loss(logits, target, smoothing)
    assert jnp.allclose(loss, ref, atol=1e-5, rtol=1e-5), (loss, ref)

    # Case 2: bf16 logits streamed natively, N not a multiple of the tile
    # (multi-tile parallel grid + ragged last block, no host-side pad).
    N2, C2 = 40, 128
    logits2 = jax.random.normal(k3, (N2, C2), dtype=jnp.float32).astype(jnp.bfloat16)
    target2 = jax.random.randint(k4, (N2,), 0, C2, dtype=jnp.int32)
    loss2 = jax.block_until_ready(
        label_smoothing_loss(logits2, target2, smoothing, tile_n=16))
    ref2 = _reference_loss(logits2, target2, smoothing)
    assert jnp.allclose(loss2, ref2, atol=2e-3, rtol=2e-3), (loss2, ref2)

    # Case 3: f32, auto tile, N not a multiple of the (auto-split >=2) tile,
    # C not a multiple of 128 -> exercises the ragged last block + the
    # 2-TensorCore split heuristic + masked lane reductions on full-extent C.
    N3, C3 = 37, 100
    logits3 = jax.random.normal(k5, (N3, C3), dtype=jnp.float32)
    target3 = jax.random.randint(k6, (N3,), 0, C3, dtype=jnp.int32)
    loss3 = jax.block_until_ready(label_smoothing_loss(logits3, target3, smoothing))
    ref3 = _reference_loss(logits3, target3, smoothing)
    assert jnp.allclose(loss3, ref3, atol=1e-5, rtol=1e-5), (loss3, ref3)

    print("KERNEL_OK")
</pallas_src>

<mosaic_0001>
module attributes {stable_mosaic.version = 11 : i64} {
  func.func @_label_smoothing_kernel(%arg0: i32, %arg1: memref<8x32xf32, #tpu.memory_space<vmem>>, %arg2: memref<8x1xi32, #tpu.memory_space<vmem>>, %arg3: memref<1x8x128xf32, #tpu.memory_space<vmem>>) attributes {dimension_semantics = [#tpu.dimension_semantics<parallel>], iteration_bounds = array<i64: 1>, scalar_prefetch = 0 : i64, scratch_operands = 0 : i64, tpu.core_type = #tpu.core_type<tc>, window_params = [{transform_indices = @transform_0, window_bounds = array<i64: 8, 32>}, {transform_indices = @transform_1, window_bounds = array<i64: 8, 1>}, {transform_indices = @transform_2, window_bounds = array<i64: 1, 8, 128>}]} {
    %c0 = arith.constant 0 : index
    %c0_0 = arith.constant 0 : index
    %0 = vector.load %arg1[%c0, %c0_0] : memref<8x32xf32, #tpu.memory_space<vmem>>, vector<8x32xf32>
    %c0_1 = arith.constant 0 : index
    %c0_2 = arith.constant 0 : index
    %1 = vector.load %arg2[%c0_1, %c0_2] : memref<8x1xi32, #tpu.memory_space<vmem>>, vector<8x1xi32>
    %cst = arith.constant dense<0xFF800000> : vector<8xf32>
    %2 = vector.multi_reduction <maximumf>, %0, %cst [1] : vector<8x32xf32> to vector<8xf32>
    %3 = vector.shape_cast %2 : vector<8xf32> to vector<8x1xf32>
    %cst_3 = arith.constant dense<0.000000e+00> : vector<8xf32>
    %4 = vector.multi_reduction <add>, %0, %cst_3 [1] : vector<8x32xf32> to vector<8xf32>
    %5 = vector.shape_cast %4 : vector<8xf32> to vector<8x1xf32>
    %6 = tpu.iota {dimensions = array<i32: 1>} : vector<8x32xi32>
    %7 = vector.broadcast %1 : vector<8x1xi32> to vector<8x32xi32>
    %8 = arith.cmpi eq, %6, %7 : vector<8x32xi32>
    %cst_4 = arith.constant 0.000000e+00 : f32
    %9 = vector.broadcast %cst_4 : f32 to vector<8x32xf32>
    %10 = arith.select %8, %0, %9 : vector<8x32xi1>, vector<8x32xf32>
    %cst_5 = arith.constant dense<0.000000e+00> : vector<8xf32>
    %11 = vector.multi_reduction <add>, %10, %cst_5 [1] : vector<8x32xf32> to vector<8xf32>
    %12 = vector.shape_cast %11 : vector<8xf32> to vector<8x1xf32>
    %13 = vector.broadcast %3 : vector<8x1xf32> to vector<8x32xf32>
    %14 = arith.subf %0, %13 : vector<8x32xf32>
    %15 = math.exp %14 : vector<8x32xf32>
    %cst_6 = arith.constant dense<0.000000e+00> : vector<8xf32>
    %16 = vector.multi_reduction <add>, %15, %cst_6 [1] : vector<8x32xf32> to vector<8xf32>
    %17 = vector.shape_cast %16 : vector<8xf32> to vector<8x1xf32>
    %18 = math.log %17 : vector<8x1xf32>
    %19 = arith.addf %3, %18 : vector<8x1xf32>
    %cst_7 = arith.constant 3.200000e+01 : f32
    %20 = vector.broadcast %cst_7 : f32 to vector<8x1xf32>
    %21 = arith.mulf %20, %19 : vector<8x1xf32>
    %22 = arith.subf %5, %21 : vector<8x1xf32>
    %23 = arith.subf %12, %3 : vector<8x1xf32>
    %24 = arith.subf %23, %18 : vector<8x1xf32>
    %cst_8 = arith.constant 0.0032258064 : f32
    %25 = vector.broadcast %cst_8 : f32 to vector<8x1xf32>
    %26 = arith.mulf %25, %22 : vector<8x1xf32>
    %cst_9 = arith.constant 0.896774172 : f32
    %27 = vector.broadcast %cst_9 : f32 to vector<8x1xf32>
    %28 = arith.mulf %27, %24 : vector<8x1xf32>
    %29 = arith.addf %26, %28 : vector<8x1xf32>
    %cst_10 = arith.constant 0.000000e+00 : f32
    %30 = vector.broadcast %cst_10 : f32 to vector<8x1xf32>
    %31 = arith.subf %30, %29 : vector<8x1xf32>
    %c8_i32 = arith.constant 8 : i32
    %32 = arith.muli %arg0, %c8_i32 : i32
    %33 = tpu.iota {dimensions = array<i32: 0>} : vector<8x1xi32>
    %34 = vector.broadcast %32 : i32 to vector<8x1xi32>
    %35 = arith.addi %34, %33 : vector<8x1xi32>
    %c8_i32_11 = arith.constant 8 : i32
    %36 = vector.broadcast %c8_i32_11 : i32 to vector<8x1xi32>
    %37 = arith.cmpi slt, %35, %36 : vector<8x1xi32>
    %cst_12 = arith.constant 0.000000e+00 : f32
    %38 = vector.broadcast %cst_12 : f32 to vector<8x1xf32>
    %39 = arith.select %37, %31, %38 : vector<8x1xi1>, vector<8x1xf32>
    %40 = vector.shape_cast %39 : vector<8x1xf32> to vector<1x8x1xf32>
    %cst_13 = arith.constant dense<0.000000e+00> : vector<1xf32>
    %41 = vector.multi_reduction <add>, %40, %cst_13 [1, 2] : vector<1x8x1xf32> to vector<1xf32>
    %42 = vector.shape_cast %41 : vector<1xf32> to vector<1x1x1xf32>
    %43 = vector.extract %42[0, 0, 0] : f32 from vector<1x1x1xf32>
    %44 = vector.broadcast %43 : f32 to vector<1x8x128xf32>
    %c0_14 = arith.constant 0 : index
    %c0_15 = arith.constant 0 : index
    %c0_16 = arith.constant 0 : index
    %45 = vector.load %arg3[%c0_14, %c0_15, %c0_16] : memref<1x8x128xf32, #tpu.memory_space<vmem>>, vector<1x8x128xf32>
    tpu.vector_store %arg3[%c0_14, %c0_15, %c0_16], %44 {strides = array<i32>} : memref<1x8x128xf32, #tpu.memory_space<vmem>>, vector<1x8x128xf32>,
    return
  }
  func.func @transform_0(%arg0: i32) -> (i32, i32) {
    %c0_i32 = arith.constant 0 : i32
    %c0_i32_0 = arith.constant 0 : i32
    return %arg0, %c0_i32 : i32, i32
  }
  func.func @transform_1(%arg0: i32) -> (i32, i32) {
    %c0_i32 = arith.constant 0 : i32
    %c0_i32_0 = arith.constant 0 : i32
    return %arg0, %c0_i32 : i32, i32
  }
  func.func @transform_2(%arg0: i32) -> (i32, i32, i32) {
    %c0_i32 = arith.constant 0 : i32
    %c0_i32_0 = arith.constant 0 : i32
    %c0_i32_1 = arith.constant 0 : i32
    return %arg0, %c0_i32, %c0_i32_0 : i32, i32, i32
  }
}

</mosaic_0001>

<bundles_post_ra>
// kernel: tpu_custom_call.1
= control target key start
LH: loop header
LB: loop body
LE: loop exit
PB: predicated region body
PF: predicated region fallthrough
CT: control target
= control target key end

     0   :  { %vm14_vm0 = vcmask 261120   ;;  %s149_s0 = inlined_call_operand.vmem [shape: f32[8,32], index: 0, kind: input, shape index: {}]   ;;  %s150_s1 = inlined_call_operand.vmem [shape: s32[8,1], index: 1, kind: input, shape index: {}]   ;;  %s151_s2 = inlined_call_operand.hbm [shape: f32[1,8,128], index: 2, kind: output, shape index: {}]  }
   0x1   :  { %v12_v0 = vld [vmem:[%s149_s0] sm:$0xff] }
   0x2   :  { %7 = vsyncpa [#allocation3], 0  ;;  %v15_v1 = vsel %vm14_vm0, %v12_v0, -inf  ;;  %v119_v2 = vmov 0   ;;  %v13_v3 = vld [vmem:[%s150_s1] sm:$0xff]  ;;  %v18_v4 = vsel %vm14_vm0, %v12_v0, 0.0  ;;  %v21_v10 = vlaneseq }
   0x3   :  { %88 = vset.pattern.permute.xlu0 %v119_v2  ;;  %19 = vadd.xlane.f32.xlu2 %v18_v4  ;;  %vm55_vm2 = vcmask 7168   ;;  %s120_s0 = smov [#allocation2]   ;;  %s75_s15 = sshll.u32 %s151_s2, 4  ;;  %s76_s15 = int_to_ptr.hbm [resolvable:$true] %s75_s15 }
   0x4   :  { %16 = vmax.xlane.f32.xlu0 %v15_v1  ;;  %v22_v11 = vand.u32 127, %v21_v10  ;;  %s73_s1 = sshll.u32 %s120_s0, 4  ;;  %s74_s1 = int_to_ptr.vmem [resolvable:$true] %s73_s1 }
  0x18   :  { %24 = vperm.xlu0 %88, %v13_v3  }
  0x76   :  { %v20_v21 = vpop.xlane.xlu2 %19 }
  0x77   :  { %v17_v5 = vpop.xlane.xlu0 %16 }
  0x78   :  { %v31_v6 = vsub.f32 %v12_v0, %v17_v5 }
  0x7a   :  { %v32_v7 = vmul.f32 1.442695, %v31_v6 }
  0x7c   :  { %89 = vpow2.f32 %v32_v7 }
  0x82   :  { %v90_v8 = vpop.eup %89 }
  0x83   :  { %v34_v9 = vsel %vm14_vm0, %v90_v8, 0.0 }
  0x84   :  { %35 = vadd.xlane.f32.xlu1 %v34_v9 }
  0x8a   :  { %v25_v12 = vpop.permute.xlu0 %24 }
  0x8b   :  { %vm26_vm1 = vcmp.eq.s32.totalorder %v22_v11, %v25_v12 }
  0x8c   :  { %v27_v13 = vsel %vm26_vm1, %v12_v0, 0.0 }
  0x8d   :  { %v28_v14 = vsel %vm14_vm0, %v27_v13, 0.0 }
  0x8e   :  { %29 = vadd.xlane.f32.xlu1 %v28_v14 }
  0xf7   :  { %v36_v15 = vpop.xlane.xlu1 %35 }
  0xf8   :  { %91 = vlog2.f32 %v36_v15 }
  0xfe   :  { %v92_v16 = vpop.eup %91 }
  0xff   :  { %v38_v17 = vmul.f32 0.6931472, %v92_v16 }
 0x101   :  { %v30_v18 = vpop.xlane.xlu1 %29  ;;  %v39_v19 = vadd.f32 %v38_v17, %v17_v5 }
 0x102   :  { %v42_v20 = vsub.f32 %v30_v18, %v17_v5 }
 0x103   :  { %v40_v22 = vmul.f32 32.0, %v39_v19 }
 0x104   :  { %v43_v23 = vsub.f32 %v42_v20, %v38_v17 }
 0x105   :  { %v41_v24 = vsub.f32 %v20_v21, %v40_v22 }
 0x106   :  { %v45_v25 = vmul.f32 0.8967742, %v43_v23 }
 0x107   :  { %v44_v26 = vmul.f32 0.0032258064, %v41_v24 }
 0x109   :  { %v46_v27 = vadd.f32 %v45_v25, %v44_v26 }
 0x10b   :  { %v47_v28 = vsub.f32 0.0, %v46_v27 }
 0x10d   :  { %v56_v29 = vsel %vm55_vm2, %v47_v28, 0.0 }
 0x10e   :  { %57 = vadd.xlane.f32.xlu2 %v56_v29 }
 0x181   :  { %v58_v30 = vpop.xlane.xlu2 %57 }
 0x182   :  { %v59_v31 = vrot.slane %v58_v30, 4 }
 0x184   :  { %v60_v32 = vadd.f32 %v59_v31, %v58_v30 }
 0x186   :  { %v61_v33 = vrot.slane %v60_v32, 2 }
 0x188   :  { %v62_v34 = vadd.f32 %v61_v33, %v60_v32 }
 0x18a   :  { %v63_v35 = vrot.slane %v62_v34, 1 }
 0x18c   :  { %v64_v36 = vadd.f32 %v63_v35, %v62_v34 }
 0x18e   :  { %84 = vpush %v64_v36 }
 0x1bf   :  { %s85_s16 = spop %84 }
 0x1c0   :  { %v66_v37 = vstv %s85_s16 }
 0x1c1   :  { %67 = vst [vmem:[#allocation2] sm:$0xff] %v66_v37 }
 0x1c2   :  { %78 = dma.vmem_to_hbm [thread:$0]  %s74_s1, 128, %s76_s15, [#allocation3]  }
 0x1c3   :  { %117 = dma.done.wait [#allocation3], 128  }
 0x1c4   :  { %118 = vsyncadd [#allocation3], 4294967168 }
 0x1c5   :  { %83 = vsyncpa [#allocation3], 1 }

</bundles_post_ra>
